<compile_context>
chip_gen: v5e
topology: v5e:2x2
jax: 0.10.0
libtpu: 0.0.40
codegen_flags: <defaults>
</compile_context>

<pallas_src>
import functools
import math

import numpy as np
import jax
import jax.numpy as jnp
from jax.experimental import pallas as pl
from jax.experimental.pallas import tpu as pltpu  # noqa: F401  (TPU backend)


# ----------------------------------------------------------------------------
# Fused MHA kernel
# ----------------------------------------------------------------------------

def _mha_fused_kernel(x_ref, ln1_g_ref, ln1_b_ref, wqkv_ref, bqkv_ref,
                      wfc_ref, bfc_ref, ln2_g_ref, ln2_b_ref,
                      w1_ref, b1_ref, w2_ref, b2_ref,
                      out_ref, attn_ref, *, head_num, attn_dim):
    B, S, D = x_ref.shape
    H, Da = head_num, attn_dim
    scale = 1.0 / math.sqrt(Da)

    x3 = x_ref[...].astype(jnp.float32)            # (B, S, D)
    x2 = x3.reshape(B * S, D)                      # flatten batch*seq for matmuls

    # ---- LayerNorm (eps = 1e-5, nn.LayerNorm default) ----
    mu = jnp.mean(x2, axis=-1, keepdims=True)
    var = jnp.mean((x2 - mu) ** 2, axis=-1, keepdims=True)
    xn = (x2 - mu) * jax.lax.rsqrt(var + 1e-5)
    xn = xn * ln1_g_ref[...] + ln1_b_ref[...]

    # ---- fused QKV projection: one MXU matmul, (B*S, 3*H*Da) ----
    qkv = jnp.dot(xn, wqkv_ref[...], preferred_element_type=jnp.float32) + bqkv_ref[...]

    head_outs = []
    head_probs = []
    for h in range(H):                              # static unroll over heads
        q_h = qkv[:, h * Da:(h + 1) * Da].reshape(B, S, Da) * scale
        k_h = qkv[:, H * Da + h * Da: H * Da + (h + 1) * Da].reshape(B, S, Da)
        v_h = qkv[:, 2 * H * Da + h * Da: 2 * H * Da + (h + 1) * Da].reshape(B, S, Da)

        s = jnp.einsum("bqd,bkd->bqk", q_h, k_h,
                       preferred_element_type=jnp.float32)       # (B, S, S)
        row = jax.lax.broadcasted_iota(jnp.int32, s.shape, 1)
        col = jax.lax.broadcasted_iota(jnp.int32, s.shape, 2)
        s = jnp.where(row == col, jnp.float32(-1e9), s)          # diagonal (self) mask

        m = jnp.max(s, axis=-1, keepdims=True)
        p = jnp.exp(s - m)
        p = p / jnp.sum(p, axis=-1, keepdims=True)               # softmax; dropout = identity
        head_probs.append(p)
        head_outs.append(jnp.einsum("bqk,bkd->bqd", p, v_h,
                                    preferred_element_type=jnp.float32))

    attn_ref[...] = jnp.stack(head_probs, axis=1)                # (B, H, S, S)

    # ---- fc projection + residual ----
    o = jnp.concatenate(head_outs, axis=-1).reshape(B * S, H * Da)
    fc = jnp.dot(o, wfc_ref[...], preferred_element_type=jnp.float32) + bfc_ref[...]
    res1 = fc + x2                                               # residual (pre-layernorm x)

    # ---- PositionWiseFeedForward (layernorm eps=1e-6, relu MLP, residual) ----
    mu2 = jnp.mean(res1, axis=-1, keepdims=True)
    var2 = jnp.mean((res1 - mu2) ** 2, axis=-1, keepdims=True)
    yn = (res1 - mu2) * jax.lax.rsqrt(var2 + 1e-6)
    yn = yn * ln2_g_ref[...] + ln2_b_ref[...]
    h1 = jnp.maximum(jnp.dot(yn, w1_ref[...], preferred_element_type=jnp.float32)
                     + b1_ref[...], 0.0)
    y = jnp.dot(h1, w2_ref[...], preferred_element_type=jnp.float32) + b2_ref[...]
    out_ref[...] = (y + res1).reshape(B, S, D)


@functools.partial(jax.jit, static_argnames=("head_num", "attn_dim"))
def mha_forward(params, x, head_num, attn_dim):
    """x: (B, S, in_dim).  Returns (output (B,S,in_dim), attn (B,H,S,S))."""
    B, S, D = x.shape
    H, Da = head_num, attn_dim

    # pre-fuse / pre-transpose weights (traced once per call; constant-folded when params static)
    wqkv = jnp.concatenate([params["q"]["w"].T, params["k"]["w"].T, params["v"]["w"].T],
                           axis=1).astype(jnp.float32)                      # (D, 3*H*Da)
    bqkv = jnp.concatenate([params["q"]["b"], params["k"]["b"], params["v"]["b"]]
                           ).reshape(1, -1).astype(jnp.float32)
    wfc = params["fc"]["w"].T.astype(jnp.float32)                           # (H*Da, D)
    bfc = params["fc"]["b"].reshape(1, -1).astype(jnp.float32)
    w1 = params["ffn"]["w1"]["w"].T.astype(jnp.float32)                     # (D, inner)
    b1 = params["ffn"]["w1"]["b"].reshape(1, -1).astype(jnp.float32)
    w2 = params["ffn"]["w2"]["w"].T.astype(jnp.float32)                     # (inner, D)
    b2 = params["ffn"]["w2"]["b"].reshape(1, -1).astype(jnp.float32)
    ln1_g = params["ln"]["g"].reshape(1, -1).astype(jnp.float32)
    ln1_b = params["ln"]["b"].reshape(1, -1).astype(jnp.float32)
    ln2_g = params["ffn"]["ln"]["g"].reshape(1, -1).astype(jnp.float32)
    ln2_b = params["ffn"]["ln"]["b"].reshape(1, -1).astype(jnp.float32)

    out, attn = pl.pallas_call(
        functools.partial(_mha_fused_kernel, head_num=H, attn_dim=Da),
        out_shape=(jax.ShapeDtypeStruct((B, S, D), jnp.float32),
                   jax.ShapeDtypeStruct((B, H, S, S), jnp.float32)),
    )(x.astype(jnp.float32), ln1_g, ln1_b, wqkv, bqkv, wfc, bfc,
      ln2_g, ln2_b, w1, b1, w2, b2)
    return out, attn


# ----------------------------------------------------------------------------
# Parameter init (PyTorch nn.Linear / nn.LayerNorm shapes & init)
# ----------------------------------------------------------------------------

class KeyGen:
    def __init__(self, key):
        self.key = key

    def __call__(self):
        self.key, sub = jax.random.split(self.key)
        return sub


def init_linear(kg, out_dim, in_dim):
    bound = 1.0 / math.sqrt(in_dim)
    return {"w": jax.random.uniform(kg(), (out_dim, in_dim), jnp.float32, -bound, bound),
            "b": jax.random.uniform(kg(), (out_dim,), jnp.float32, -bound, bound)}


def init_layernorm(dim):
    return {"g": jnp.ones((dim,), jnp.float32), "b": jnp.zeros((dim,), jnp.float32)}


def init_mha(kg, in_dim, head_num, attn_dim, inner_dim):
    return {"ln": init_layernorm(in_dim),
            "q": init_linear(kg, head_num * attn_dim, in_dim),
            "k": init_linear(kg, head_num * attn_dim, in_dim),
            "v": init_linear(kg, head_num * attn_dim, in_dim),
            "fc": init_linear(kg, in_dim, head_num * attn_dim),
            "ffn": {"ln": init_layernorm(in_dim),
                    "w1": init_linear(kg, inner_dim, in_dim),
                    "w2": init_linear(kg, in_dim, inner_dim)}}


# ----------------------------------------------------------------------------
# Pure-JAX reference (mirrors the PyTorch forward exactly, eval-mode dropout)
# ----------------------------------------------------------------------------

def mha_reference(params, x, head_num, attn_dim):
    B, S, D = x.shape
    H, Da = head_num, attn_dim

    def lin(p, v):
        return v @ p["w"].T + p["b"]

    residual = x
    mu = jnp.mean(x, axis=-1, keepdims=True)
    var = jnp.mean((x - mu) ** 2, axis=-1, keepdims=True)
    xn = (x - mu) / jnp.sqrt(var + 1e-5) * params["ln"]["g"] + params["ln"]["b"]

    Q = lin(params["q"], xn).reshape(B, S, H, Da).transpose(0, 2, 1, 3)
    K = lin(params["k"], xn).reshape(B, S, H, Da).transpose(0, 2, 1, 3)
    V = lin(params["v"], xn).reshape(B, S, H, Da).transpose(0, 2, 1, 3)

    scores = (Q / math.sqrt(Da)) @ jnp.swapaxes(K, -1, -2)
    eye = jnp.eye(S, dtype=jnp.float32)[None, None]
    scores = jnp.where(eye == 1, -1e9, scores)
    attn = jax.nn.softmax(scores, axis=-1)
    out = attn @ V
    out = out.transpose(0, 2, 1, 3).reshape(B, S, H * Da)
    out = lin(params["fc"], out) + residual

    resid2 = out
    mu2 = jnp.mean(out, axis=-1, keepdims=True)
    var2 = jnp.mean((out - mu2) ** 2, axis=-1, keepdims=True)
    on = ((out - mu2) / jnp.sqrt(var2 + 1e-6)
          * params["ffn"]["ln"]["g"] + params["ffn"]["ln"]["b"])
    h1 = jax.nn.relu(lin(params["ffn"]["w1"], on))
    y = lin(params["ffn"]["w2"], h1) + resid2
    return y, attn


# ----------------------------------------------------------------------------
# Main
# ----------------------------------------------------------------------------

if __name__ == "__main__":
    B, S, in_dim = 2, 8, 32
    head_num, attn_dim, inner_dim = 2, 16, 32

    kg = KeyGen(jax.random.PRNGKey(0))
    params = init_mha(kg, in_dim, head_num, attn_dim, inner_dim)
    x = jax.random.normal(kg(), (B, S, in_dim), jnp.float32)

    out, attn = mha_forward(params, x, head_num, attn_dim)
    jax.block_until_ready((out, attn))

    assert out.shape == (B, S, in_dim)
    assert attn.shape == (B, head_num, S, S)

    # correctness check against a pure-JAX reference (f32 matmul precision)
    with jax.default_matmul_precision("float32"):
        ref_out, ref_attn = mha_reference(params, x, head_num, attn_dim)
        ref_out, ref_attn = jax.block_until_ready((ref_out, ref_attn))
    np.testing.assert_allclose(np.asarray(out), np.asarray(ref_out), rtol=1e-3, atol=1e-3)
    np.testing.assert_allclose(np.asarray(attn), np.asarray(ref_attn), rtol=1e-3, atol=1e-3)

    print("KERNEL_OK")
</pallas_src>

<mosaic_0001>
module attributes {stable_mosaic.version = 11 : i64} {
  func.func @_mha_fused_kernel(%arg0: memref<2x8x32xf32, #tpu.memory_space<vmem>>, %arg1: memref<1x32xf32, #tpu.memory_space<vmem>>, %arg2: memref<1x32xf32, #tpu.memory_space<vmem>>, %arg3: memref<32x96xf32, #tpu.memory_space<vmem>>, %arg4: memref<1x96xf32, #tpu.memory_space<vmem>>, %arg5: memref<32x32xf32, #tpu.memory_space<vmem>>, %arg6: memref<1x32xf32, #tpu.memory_space<vmem>>, %arg7: memref<1x32xf32, #tpu.memory_space<vmem>>, %arg8: memref<1x32xf32, #tpu.memory_space<vmem>>, %arg9: memref<32x32xf32, #tpu.memory_space<vmem>>, %arg10: memref<1x32xf32, #tpu.memory_space<vmem>>, %arg11: memref<32x32xf32, #tpu.memory_space<vmem>>, %arg12: memref<1x32xf32, #tpu.memory_space<vmem>>, %arg13: memref<2x8x32xf32, #tpu.memory_space<vmem>>, %arg14: memref<2x2x8x8xf32, #tpu.memory_space<vmem>>) attributes {dimension_semantics = [], scalar_prefetch = 0 : i64, scratch_operands = 0 : i64, tpu.core_type = #tpu.core_type<tc>} {
    %c0 = arith.constant 0 : index
    %c0_0 = arith.constant 0 : index
    %c0_1 = arith.constant 0 : index
    %0 = vector.load %arg0[%c0, %c0_0, %c0_1] : memref<2x8x32xf32, #tpu.memory_space<vmem>>, vector<2x8x32xf32>
    %1 = vector.shape_cast %0 : vector<2x8x32xf32> to vector<16x32xf32>
    %cst = arith.constant dense<0.000000e+00> : vector<16xf32>
    %2 = vector.multi_reduction <add>, %1, %cst [1] : vector<16x32xf32> to vector<16xf32>
    %3 = vector.shape_cast %2 : vector<16xf32> to vector<16x1xf32>
    %cst_2 = arith.constant 3.200000e+01 : f32
    %4 = vector.broadcast %cst_2 : f32 to vector<16x1xf32>
    %5 = arith.divf %3, %4 : vector<16x1xf32>
    %6 = vector.broadcast %5 : vector<16x1xf32> to vector<16x32xf32>
    %7 = arith.subf %1, %6 : vector<16x32xf32>
    %8 = arith.mulf %7, %7 : vector<16x32xf32>
    %cst_3 = arith.constant dense<0.000000e+00> : vector<16xf32>
    %9 = vector.multi_reduction <add>, %8, %cst_3 [1] : vector<16x32xf32> to vector<16xf32>
    %10 = vector.shape_cast %9 : vector<16xf32> to vector<16x1xf32>
    %cst_4 = arith.constant 3.200000e+01 : f32
    %11 = vector.broadcast %cst_4 : f32 to vector<16x1xf32>
    %12 = arith.divf %10, %11 : vector<16x1xf32>
    %13 = vector.broadcast %5 : vector<16x1xf32> to vector<16x32xf32>
    %14 = arith.subf %1, %13 : vector<16x32xf32>
    %cst_5 = arith.constant 9.99999974E-6 : f32
    %15 = vector.broadcast %cst_5 : f32 to vector<16x1xf32>
    %16 = arith.addf %12, %15 : vector<16x1xf32>
    %17 = math.rsqrt %16 : vector<16x1xf32>
    %18 = vector.broadcast %17 : vector<16x1xf32> to vector<16x32xf32>
    %19 = arith.mulf %14, %18 : vector<16x32xf32>
    %c0_6 = arith.constant 0 : index
    %c0_7 = arith.constant 0 : index
    %20 = vector.load %arg1[%c0_6, %c0_7] : memref<1x32xf32, #tpu.memory_space<vmem>>, vector<1x32xf32>
    %21 = vector.broadcast %20 : vector<1x32xf32> to vector<16x32xf32>
    %22 = arith.mulf %19, %21 : vector<16x32xf32>
    %c0_8 = arith.constant 0 : index
    %c0_9 = arith.constant 0 : index
    %23 = vector.load %arg2[%c0_8, %c0_9] : memref<1x32xf32, #tpu.memory_space<vmem>>, vector<1x32xf32>
    %24 = vector.broadcast %23 : vector<1x32xf32> to vector<16x32xf32>
    %25 = arith.addf %22, %24 : vector<16x32xf32>
    %c0_10 = arith.constant 0 : index
    %c0_11 = arith.constant 0 : index
    %26 = vector.load %arg3[%c0_10, %c0_11] : memref<32x96xf32, #tpu.memory_space<vmem>>, vector<32x96xf32>
    %cst_12 = arith.constant dense<0.000000e+00> : vector<16x96xf32>
    %27 = tpu.matmul %25, %26, %cst_12 {dimension_numbers = #tpu.dot_dimension_numbers<[1], [0], [0], [1], [0, 0, 1, 1], [], []>} : vector<16x32xf32>, vector<32x96xf32>, vector<16x96xf32> -> vector<16x96xf32>
    %c0_13 = arith.constant 0 : index
    %c0_14 = arith.constant 0 : index
    %28 = vector.load %arg4[%c0_13, %c0_14] : memref<1x96xf32, #tpu.memory_space<vmem>>, vector<1x96xf32>
    %29 = vector.broadcast %28 : vector<1x96xf32> to vector<16x96xf32>
    %30 = arith.addf %27, %29 : vector<16x96xf32>
    %31 = vector.extract_strided_slice %30 {offsets = [0, 0], sizes = [16, 16], strides = [1, 1]} : vector<16x96xf32> to vector<16x16xf32>
    %32 = vector.shape_cast %31 : vector<16x16xf32> to vector<2x8x16xf32>
    %cst_15 = arith.constant 2.500000e-01 : f32
    %33 = vector.broadcast %cst_15 : f32 to vector<2x8x16xf32>
    %34 = arith.mulf %32, %33 : vector<2x8x16xf32>
    %35 = vector.extract_strided_slice %30 {offsets = [0, 32], sizes = [16, 16], strides = [1, 1]} : vector<16x96xf32> to vector<16x16xf32>
    %36 = vector.shape_cast %35 : vector<16x16xf32> to vector<2x8x16xf32>
    %37 = vector.extract_strided_slice %30 {offsets = [0, 64], sizes = [16, 16], strides = [1, 1]} : vector<16x96xf32> to vector<16x16xf32>
    %38 = vector.shape_cast %37 : vector<16x16xf32> to vector<2x8x16xf32>
    "tpu.trace_start"() <{level = 10 : i32, message = "bqd,bkd->bqk"}> : () -> ()
    %cst_16 = arith.constant dense<0.000000e+00> : vector<2x8x8xf32>
    %39 = tpu.matmul %34, %36, %cst_16 {dimension_numbers = #tpu.dot_dimension_numbers<[2], [2], [1], [1], [0, 0, 0, 1, 1, 1], [0], [0]>} : vector<2x8x16xf32>, vector<2x8x16xf32>, vector<2x8x8xf32> -> vector<2x8x8xf32>
    "tpu.trace_stop"() : () -> ()
    %40 = tpu.iota {dimensions = array<i32: 1>} : vector<2x8x8xi32>
    %41 = tpu.iota {dimensions = array<i32: 2>} : vector<2x8x8xi32>
    %42 = arith.cmpi eq, %40, %41 : vector<2x8x8xi32>
    %cst_17 = arith.constant -1.000000e+09 : f32
    %43 = vector.broadcast %cst_17 : f32 to vector<2x8x8xf32>
    %44 = arith.select %42, %43, %39 : vector<2x8x8xi1>, vector<2x8x8xf32>
    %cst_18 = arith.constant dense<0xFF800000> : vector<2x8xf32>
    %45 = vector.multi_reduction <maximumf>, %44, %cst_18 [2] : vector<2x8x8xf32> to vector<2x8xf32>
    %46 = vector.shape_cast %45 : vector<2x8xf32> to vector<2x8x1xf32>
    %47 = vector.broadcast %46 : vector<2x8x1xf32> to vector<2x8x8xf32>
    %48 = arith.subf %44, %47 : vector<2x8x8xf32>
    %49 = math.exp %48 : vector<2x8x8xf32>
    %cst_19 = arith.constant dense<0.000000e+00> : vector<2x8xf32>
    %50 = vector.multi_reduction <add>, %49, %cst_19 [2] : vector<2x8x8xf32> to vector<2x8xf32>
    %51 = vector.shape_cast %50 : vector<2x8xf32> to vector<2x8x1xf32>
    %52 = vector.broadcast %51 : vector<2x8x1xf32> to vector<2x8x8xf32>
    %53 = arith.divf %49, %52 : vector<2x8x8xf32>
    "tpu.trace_start"() <{level = 10 : i32, message = "bqk,bkd->bqd"}> : () -> ()
    %cst_20 = arith.constant dense<0.000000e+00> : vector<2x8x16xf32>
    %54 = tpu.matmul %53, %38, %cst_20 {dimension_numbers = #tpu.dot_dimension_numbers<[2], [1], [1], [2], [0, 0, 0, 1, 1, 2], [0], [0]>} : vector<2x8x8xf32>, vector<2x8x16xf32>, vector<2x8x16xf32> -> vector<2x8x16xf32>
    "tpu.trace_stop"() : () -> ()
    %55 = vector.extract_strided_slice %30 {offsets = [0, 16], sizes = [16, 16], strides = [1, 1]} : vector<16x96xf32> to vector<16x16xf32>
    %56 = vector.shape_cast %55 : vector<16x16xf32> to vector<2x8x16xf32>
    %cst_21 = arith.constant 2.500000e-01 : f32
    %57 = vector.broadcast %cst_21 : f32 to vector<2x8x16xf32>
    %58 = arith.mulf %56, %57 : vector<2x8x16xf32>
    %59 = vector.extract_strided_slice %30 {offsets = [0, 48], sizes = [16, 16], strides = [1, 1]} : vector<16x96xf32> to vector<16x16xf32>
    %60 = vector.shape_cast %59 : vector<16x16xf32> to vector<2x8x16xf32>
    %61 = vector.extract_strided_slice %30 {offsets = [0, 80], sizes = [16, 16], strides = [1, 1]} : vector<16x96xf32> to vector<16x16xf32>
    %62 = vector.shape_cast %61 : vector<16x16xf32> to vector<2x8x16xf32>
    "tpu.trace_start"() <{level = 10 : i32, message = "bqd,bkd->bqk"}> : () -> ()
    %cst_22 = arith.constant dense<0.000000e+00> : vector<2x8x8xf32>
    %63 = tpu.matmul %58, %60, %cst_22 {dimension_numbers = #tpu.dot_dimension_numbers<[2], [2], [1], [1], [0, 0, 0, 1, 1, 1], [0], [0]>} : vector<2x8x16xf32>, vector<2x8x16xf32>, vector<2x8x8xf32> -> vector<2x8x8xf32>
    "tpu.trace_stop"() : () -> ()
    %64 = tpu.iota {dimensions = array<i32: 1>} : vector<2x8x8xi32>
    %65 = tpu.iota {dimensions = array<i32: 2>} : vector<2x8x8xi32>
    %66 = arith.cmpi eq, %64, %65 : vector<2x8x8xi32>
    %cst_23 = arith.constant -1.000000e+09 : f32
    %67 = vector.broadcast %cst_23 : f32 to vector<2x8x8xf32>
    %68 = arith.select %66, %67, %63 : vector<2x8x8xi1>, vector<2x8x8xf32>
    %cst_24 = arith.constant dense<0xFF800000> : vector<2x8xf32>
    %69 = vector.multi_reduction <maximumf>, %68, %cst_24 [2] : vector<2x8x8xf32> to vector<2x8xf32>
    %70 = vector.shape_cast %69 : vector<2x8xf32> to vector<2x8x1xf32>
    %71 = vector.broadcast %70 : vector<2x8x1xf32> to vector<2x8x8xf32>
    %72 = arith.subf %68, %71 : vector<2x8x8xf32>
    %73 = math.exp %72 : vector<2x8x8xf32>
    %cst_25 = arith.constant dense<0.000000e+00> : vector<2x8xf32>
    %74 = vector.multi_reduction <add>, %73, %cst_25 [2] : vector<2x8x8xf32> to vector<2x8xf32>
    %75 = vector.shape_cast %74 : vector<2x8xf32> to vector<2x8x1xf32>
    %76 = vector.broadcast %75 : vector<2x8x1xf32> to vector<2x8x8xf32>
    %77 = arith.divf %73, %76 : vector<2x8x8xf32>
    "tpu.trace_start"() <{level = 10 : i32, message = "bqk,bkd->bqd"}> : () -> ()
    %cst_26 = arith.constant dense<0.000000e+00> : vector<2x8x16xf32>
    %78 = tpu.matmul %77, %62, %cst_26 {dimension_numbers = #tpu.dot_dimension_numbers<[2], [1], [1], [2], [0, 0, 0, 1, 1, 2], [0], [0]>} : vector<2x8x8xf32>, vector<2x8x16xf32>, vector<2x8x16xf32> -> vector<2x8x16xf32>
    "tpu.trace_stop"() : () -> ()
    %79 = vector.shape_cast %53 : vector<2x8x8xf32> to vector<2x1x8x8xf32>
    %80 = vector.shape_cast %77 : vector<2x8x8xf32> to vector<2x1x8x8xf32>
    %81 = tpu.concatenate %79, %80 in 1 : vector<2x1x8x8xf32>, vector<2x1x8x8xf32> -> vector<2x2x8x8xf32>
    %c0_27 = arith.constant 0 : index
    %c0_28 = arith.constant 0 : index
    %c0_29 = arith.constant 0 : index
    %c0_30 = arith.constant 0 : index
    %82 = vector.load %arg14[%c0_27, %c0_28, %c0_29, %c0_30] : memref<2x2x8x8xf32, #tpu.memory_space<vmem>>, vector<2x2x8x8xf32>
    tpu.vector_store %arg14[%c0_27, %c0_28, %c0_29, %c0_30], %81 {strides = array<i32>} : memref<2x2x8x8xf32, #tpu.memory_space<vmem>>, vector<2x2x8x8xf32>,
    %83 = tpu.concatenate %54, %78 in 2 : vector<2x8x16xf32>, vector<2x8x16xf32> -> vector<2x8x32xf32>
    %84 = vector.shape_cast %83 : vector<2x8x32xf32> to vector<16x32xf32>
    %c0_31 = arith.constant 0 : index
    %c0_32 = arith.constant 0 : index
    %85 = vector.load %arg5[%c0_31, %c0_32] : memref<32x32xf32, #tpu.memory_space<vmem>>, vector<32x32xf32>
    %cst_33 = arith.constant dense<0.000000e+00> : vector<16x32xf32>
    %86 = tpu.matmul %84, %85, %cst_33 {dimension_numbers = #tpu.dot_dimension_numbers<[1], [0], [0], [1], [0, 0, 1, 1], [], []>} : vector<16x32xf32>, vector<32x32xf32>, vector<16x32xf32> -> vector<16x32xf32>
    %c0_34 = arith.constant 0 : index
    %c0_35 = arith.constant 0 : index
    %87 = vector.load %arg6[%c0_34, %c0_35] : memref<1x32xf32, #tpu.memory_space<vmem>>, vector<1x32xf32>
    %88 = vector.broadcast %87 : vector<1x32xf32> to vector<16x32xf32>
    %89 = arith.addf %86, %88 : vector<16x32xf32>
    %90 = arith.addf %89, %1 : vector<16x32xf32>
    %cst_36 = arith.constant dense<0.000000e+00> : vector<16xf32>
    %91 = vector.multi_reduction <add>, %90, %cst_36 [1] : vector<16x32xf32> to vector<16xf32>
    %92 = vector.shape_cast %91 : vector<16xf32> to vector<16x1xf32>
    %cst_37 = arith.constant 3.200000e+01 : f32
    %93 = vector.broadcast %cst_37 : f32 to vector<16x1xf32>
    %94 = arith.divf %92, %93 : vector<16x1xf32>
    %95 = vector.broadcast %94 : vector<16x1xf32> to vector<16x32xf32>
    %96 = arith.subf %90, %95 : vector<16x32xf32>
    %97 = arith.mulf %96, %96 : vector<16x32xf32>
    %cst_38 = arith.constant dense<0.000000e+00> : vector<16xf32>
    %98 = vector.multi_reduction <add>, %97, %cst_38 [1] : vector<16x32xf32> to vector<16xf32>
    %99 = vector.shape_cast %98 : vector<16xf32> to vector<16x1xf32>
    %cst_39 = arith.constant 3.200000e+01 : f32
    %100 = vector.broadcast %cst_39 : f32 to vector<16x1xf32>
    %101 = arith.divf %99, %100 : vector<16x1xf32>
    %102 = vector.broadcast %94 : vector<16x1xf32> to vector<16x32xf32>
    %103 = arith.subf %90, %102 : vector<16x32xf32>
    %cst_40 = arith.constant 9.99999997E-7 : f32
    %104 = vector.broadcast %cst_40 : f32 to vector<16x1xf32>
    %105 = arith.addf %101, %104 : vector<16x1xf32>
    %106 = math.rsqrt %105 : vector<16x1xf32>
    %107 = vector.broadcast %106 : vector<16x1xf32> to vector<16x32xf32>
    %108 = arith.mulf %103, %107 : vector<16x32xf32>
    %c0_41 = arith.constant 0 : index
    %c0_42 = arith.constant 0 : index
    %109 = vector.load %arg7[%c0_41, %c0_42] : memref<1x32xf32, #tpu.memory_space<vmem>>, vector<1x32xf32>
    %110 = vector.broadcast %109 : vector<1x32xf32> to vector<16x32xf32>
    %111 = arith.mulf %108, %110 : vector<16x32xf32>
    %c0_43 = arith.constant 0 : index
    %c0_44 = arith.constant 0 : index
    %112 = vector.load %arg8[%c0_43, %c0_44] : memref<1x32xf32, #tpu.memory_space<vmem>>, vector<1x32xf32>
    %113 = vector.broadcast %112 : vector<1x32xf32> to vector<16x32xf32>
    %114 = arith.addf %111, %113 : vector<16x32xf32>
    %c0_45 = arith.constant 0 : index
    %c0_46 = arith.constant 0 : index
    %115 = vector.load %arg9[%c0_45, %c0_46] : memref<32x32xf32, #tpu.memory_space<vmem>>, vector<32x32xf32>
    %cst_47 = arith.constant dense<0.000000e+00> : vector<16x32xf32>
    %116 = tpu.matmul %114, %115, %cst_47 {dimension_numbers = #tpu.dot_dimension_numbers<[1], [0], [0], [1], [0, 0, 1, 1], [], []>} : vector<16x32xf32>, vector<32x32xf32>, vector<16x32xf32> -> vector<16x32xf32>
    %c0_48 = arith.constant 0 : index
    %c0_49 = arith.constant 0 : index
    %117 = vector.load %arg10[%c0_48, %c0_49] : memref<1x32xf32, #tpu.memory_space<vmem>>, vector<1x32xf32>
    %118 = vector.broadcast %117 : vector<1x32xf32> to vector<16x32xf32>
    %119 = arith.addf %116, %118 : vector<16x32xf32>
    %cst_50 = arith.constant 0.000000e+00 : f32
    %120 = vector.broadcast %cst_50 : f32 to vector<16x32xf32>
    %121 = arith.maximumf %119, %120 : vector<16x32xf32>
    %c0_51 = arith.constant 0 : index
    %c0_52 = arith.constant 0 : index
    %122 = vector.load %arg11[%c0_51, %c0_52] : memref<32x32xf32, #tpu.memory_space<vmem>>, vector<32x32xf32>
    %cst_53 = arith.constant dense<0.000000e+00> : vector<16x32xf32>
    %123 = tpu.matmul %121, %122, %cst_53 {dimension_numbers = #tpu.dot_dimension_numbers<[1], [0], [0], [1], [0, 0, 1, 1], [], []>} : vector<16x32xf32>, vector<32x32xf32>, vector<16x32xf32> -> vector<16x32xf32>
    %c0_54 = arith.constant 0 : index
    %c0_55 = arith.constant 0 : index
    %124 = vector.load %arg12[%c0_54, %c0_55] : memref<1x32xf32, #tpu.memory_space<vmem>>, vector<1x32xf32>
    %125 = vector.broadcast %124 : vector<1x32xf32> to vector<16x32xf32>
    %126 = arith.addf %123, %125 : vector<16x32xf32>
    %127 = arith.addf %126, %90 : vector<16x32xf32>
    %128 = vector.shape_cast %127 : vector<16x32xf32> to vector<2x8x32xf32>
    %c0_56 = arith.constant 0 : index
    %c0_57 = arith.constant 0 : index
    %c0_58 = arith.constant 0 : index
    %129 = vector.load %arg13[%c0_56, %c0_57, %c0_58] : memref<2x8x32xf32, #tpu.memory_space<vmem>>, vector<2x8x32xf32>
    tpu.vector_store %arg13[%c0_56, %c0_57, %c0_58], %128 {strides = array<i32>} : memref<2x8x32xf32, #tpu.memory_space<vmem>>, vector<2x8x32xf32>,
    return
  }
}

</mosaic_0001>

<bundles_post_ra>
// kernel: mha_forward.1
= control target key start
LH: loop header
LB: loop body
LE: loop exit
PB: predicated region body
PF: predicated region fallthrough
CT: control target
= control target key end

     0   :  { %20 = vsyncpa [#allocation3], 0  ;;  %vm50_vm0 = vcmask 261120   ;;  %s1099_s0 = inlined_call_operand.vmem [shape: f32[2,8,32], index: 0, kind: input, shape index: {}]   ;;  %s1100_s1 = inlined_call_operand.vmem [shape: f32[1,32], index: 1, kind: input, shape index: {}]   ;;  %s1101_s2 = inlined_call_operand.vmem [shape: f32[1,32], index: 2, kind: input, shape index: {}]   ;;  %s1102_s3 = inlined_call_operand.vmem [shape: f32[32,96], index: 3, kind: input, shape index: {}]   ;;  %s1103_s4 = inlined_call_operand.vmem [shape: f32[1,96], index: 4, kind: input, shape index: {}]   ;;  %s1104_s5 = inlined_call_operand.vmem [shape: f32[32,32], index: 5, kind: input, shape index: {}]   ;;  %s1105_s6 = inlined_call_operand.vmem [shape: f32[1,32], index: 6, kind: input, shape index: {}]   ;;  %s1106_s7 = inlined_call_operand.vmem [shape: f32[1,32], index: 7, kind: input, shape index: {}]   ;;  %s1107_s8 = inlined_call_operand.vmem [shape: f32[1,32], index: 8, kind: input, shape index: {}]   ;;  %s1108_s9 = inlined_call_operand.vmem [shape: f32[32,32], index: 9, kind: input, shape index: {}]   ;;  %s1109_s10 = inlined_call_operand.vmem [shape: f32[1,32], index: 10, kind: input, shape index: {}]   ;;  %s1110_s11 = inlined_call_operand.vmem [shape: f32[32,32], index: 11, kind: input, shape index: {}]   ;;  %s1111_s12 = inlined_call_operand.vmem [shape: f32[1,32], index: 12, kind: input, shape index: {}]   ;;  %s1112_s13 = inlined_call_operand.hbm [shape: f32[2,8,32], index: 13, kind: output, shape index: {0}]   ;;  %s1113_s14 = inlined_call_operand.hbm [shape: f32[2,2,8,8], index: 14, kind: output, shape index: {1}]  }
   0x1   :  { %v907_v0 = vld [vmem:[%s1099_s0] sm:$0xff] }
   0x2   :  { %v51_v1 = vsel %vm50_vm0, %v907_v0, 0.0 }
   0x3   :  { %52 = vadd.xlane.f32.xlu0 %v51_v1 }
   0x4   :  { %21 = vsyncpa [#allocation5], 0  ;;  %v818_v2 = vmov 32.0   ;;  %v914_v3 = vld [vmem:[%s1099_s0 + $0x8] sm:$0xff]  ;;  %v117_v16 = vld [vmem:[%s1102_s3 + $0x18] sm:$0xff]  ;;  %s820_s28 = smov 96   ;;  %v210_v62 = vlaneseq }
   0x5   :  { %740 = vrcp.f32 %v818_v2  ;;  %v54_v4 = vsel %vm50_vm0, %v914_v3, 0.0  ;;  %140 = vmatpush.msra.mxu0 %v117_v16  ;;  %v116_v17 = vld [vmem:[%s1102_s3 + $0x10] sm:$0xff]  ;;  %v115_v18 = vld [vmem:[%s1102_s3 + $0x8] sm:$0xff]  ;;  %v114_v19 = vld [vmem:[%s1102_s3] sm:$0xff]  ;;  %vm156_vm8 = vcmask 130048   ;;  %vm217_vm10 = vcmask 64512  }
   0x6   :  { %55 = vadd.xlane.f32.xlu1 %v54_v4  ;;  %v732_v34 = vld [vmem:[%s1100_s1] ss:$0 sm:$0xff]  ;;  %v964_v63 = vshrl.u32 %v210_v62, 7  ;;  %v966_v1 = vand.u32 127, %v210_v62  ;;  %s822_s29 = smov 112   ;;  %s823_s30 = smov 48  }
   0x7   :  { %141 = vmatpush.msra.mxu0 %v116_v17  ;;  %v733_v37 = vld [vmem:[%s1101_s2] ss:$0 sm:$0xff]  ;;  %s819_s2 = smov 64   ;;  %s824_s20 = smov 16  }
   0x8   :  { %v734_v47 = vld [vmem:[%s1103_s4] ss:$0 sm:$0xff]  ;;  %s821_s4 = smov 80   ;;  %vm214_vm9 = vcmp.eq.s32.totalorder %v964_v63, %v966_v1  ;;  %s825_s21 = smov [#allocation4]  }
   0x9   :  { %142 = vmatpush.msra.mxu0 %v115_v18  ;;  %s682_s22 = sshll.u32 %s825_s21, 4  ;;  %s828_s25 = smov [#allocation2]   ;;  %s683_s22 = int_to_ptr.vmem [resolvable:$true] %s682_s22 }
   0xa   :  { %s669_s26 = sshll.u32 %s828_s25, 4  ;;  %s671_s27 = sshll.u32 %s1112_s13, 4  ;;  %s670_s26 = int_to_ptr.vmem [resolvable:$true] %s669_s26  ;;  %s672_s27 = int_to_ptr.hbm [resolvable:$true] %s671_s27 }
   0xb   :  { %v741_v5 = vpop.eup %740  ;;  %143 = vmatpush.msra.mxu0 %v114_v19 }
   0xc   :  { %v58_v6 = vmul.f32 32.0, %v741_v5  ;;  %vm62_vm1 = vweird.f32 %v741_v5 }
   0xe   :  { %v59_v7 = vsub.f32 1.0, %v58_v6 }
  0x10   :  { %v60_v8 = vmul.f32 %v741_v5, %v59_v7 }
  0x12   :  { %v61_v9 = vadd.f32 %v741_v5, %v60_v8 }
  0x14   :  { %v918_v10 = vsel %vm62_vm1, %v741_v5, %v61_v9 }
  0x76   :  { %v53_v11 = vpop.xlane.xlu0 %52 }
  0x77   :  { %v64_v12 = vmul.f32 %v918_v10, %v53_v11 }
  0x79   :  { %v66_v13 = vsub.f32 %v907_v0, %v64_v12  ;;  %v56_v20 = vpop.xlane.xlu1 %55 }
  0x7a   :  { %v65_v21 = vmul.f32 %v918_v10, %v56_v20 }
  0x7b   :  { %v68_v14 = vmul.f32 %v66_v13, %v66_v13 }
  0x7c   :  { %v67_v23 = vsub.f32 %v914_v3, %v65_v21 }
  0x7d   :  { %v70_v15 = vsel %vm50_vm0, %v68_v14, 0.0 }
  0x7e   :  { %71 = vadd.xlane.f32.xlu0 %v70_v15  ;;  %v69_v25 = vmul.f32 %v67_v23, %v67_v23 }
  0x80   :  { %v73_v27 = vsel %vm50_vm0, %v69_v25, 0.0 }
  0x81   :  { %74 = vadd.xlane.f32.xlu2 %v73_v27 }
  0xf1   :  { %v72_v22 = vpop.xlane.xlu0 %71 }
  0xf2   :  { %v76_v24 = vmul.f32 %v72_v22, %v918_v10 }
  0xf4   :  { %v78_v26 = vadd.f32 1e-05, %v76_v24  ;;  %v75_v40 = vpop.xlane.xlu2 %74 }
  0xf5   :  { %v77_v41 = vmul.f32 %v75_v40, %v918_v10 }
  0xf6   :  { %742 = vrsqrt.f32 %v78_v26  ;;  %vm86_vm3 = vweird.f32 %v78_v26 }
  0xf7   :  { %v79_v42 = vadd.f32 1e-05, %v77_v41 }
  0xf9   :  { %744 = vrsqrt.f32 %v79_v42  ;;  %vm96_vm5 = vweird.f32 %v79_v42 }
  0xfc   :  { %v743_v28 = vpop.eup %742 }
  0xfd   :  { %v81_v29 = vmul.f32 %v743_v28, %v78_v26  ;;  %vm87_vm2 = vweird.f32 %v743_v28 }
  0xfe   :  { %vm88_vm4 = vmor %vm86_vm3, %vm87_vm2 }
  0xff   :  { %v82_v30 = vmul.f32 %v743_v28, %v81_v29  ;;  %v745_v43 = vpop.eup %744 }
 0x100   :  { %v91_v44 = vmul.f32 %v745_v43, %v79_v42  ;;  %vm97_vm6 = vweird.f32 %v745_v43 }
 0x101   :  { %v83_v31 = vmul.f32 0.5, %v82_v30  ;;  %vm98_vm7 = vmor %vm96_vm5, %vm97_vm6 }
 0x102   :  { %v92_v45 = vmul.f32 %v745_v43, %v91_v44 }
 0x103   :  { %v84_v32 = vsub.f32 1.5, %v83_v31 }
 0x104   :  { %v93_v46 = vmul.f32 0.5, %v92_v45 }
 0x105   :  { %v85_v33 = vmul.f32 %v743_v28, %v84_v32 }
 0x106   :  { %v94_v48 = vsub.f32 1.5, %v93_v46 }
 0x107   :  { %v89_v35 = vsel %vm88_vm4, %v743_v28, %v85_v33 }
 0x108   :  { %v100_v36 = vmul.f32 %v89_v35, %v66_v13  ;;  %v95_v49 = vmul.f32 %v745_v43, %v94_v48 }
 0x10a   :  { %v106_v38 = vmul.f32 %v732_v34, %v100_v36  ;;  %v99_v52 = vsel %vm98_vm7, %v745_v43, %v95_v49 }
 0x10b   :  { %v101_v53 = vmul.f32 %v99_v52, %v67_v23 }
 0x10c   :  { %v112_v39 = vadd.f32 %v733_v37, %v106_v38 }
 0x10d   :  { %v107_v54 = vmul.f32 %v732_v34, %v101_v53 }
 0x10e   :  { %701 = vmatmul.msk.f32.vlgmr.msra.gmra.mxu0 %vm50_vm0, %v112_v39 }
 0x10f   :  { %v113_v55 = vadd.f32 %v733_v37, %v107_v54 }
 0x116   :  { %702 = vmatmul.msk.f32.gmra.mxu0 %vm50_vm0, %v113_v55 }
 0x18b   :  { %v145_v50 = vpop.f32.mrf.mxu0 }
 0x18c   :  { %v950_v51 = vadd.f32 %v734_v47, %v145_v50 }
 0x18e   :  { %266 = vrot.lane.b32.xlu0 %v950_v51, %s819_s2  ;;  %154 = vrot.lane.b32.xlu1 %v950_v51, %s820_s28  ;;  %v151_v58 = vmul.f32 0.25, %v950_v51 }
 0x193   :  { %v148_v60 = vpop.f32.mrf.mxu0 }
 0x194   :  { %v961_v61 = vadd.f32 %v734_v47, %v148_v60 }
 0x196   :  { %320 = vrot.lane.b32.xlu1 %v950_v51, %s821_s4  ;;  %v152_v12 = vmul.f32 0.25, %v961_v61 }
 0x19e   :  { %348 = vrot.lane.b32.xlu1 %v961_v61, %s821_s4 }
 0x200   :  { %v267_v56 = vpop.permute.xlu0 %266  ;;  %v155_v57 = vpop.permute.xlu1 %154 }
 0x201   :  { %703 = vmatpush.xpose.msk.msra.mxu1 %vm156_vm8, %v155_v57 }
 0x204   :  { %704 = vmatmul.msk.f32.vlgmr.msra.gmra.mxu1 %vm156_vm8, %v151_v58 }
 0x205   :  { %287 = vmatpush.msrb.mxu1 %v267_v56 }
 0x208   :  { %v321_v59 = vpop.permute.xlu1 %320 }
 0x209   :  { %709 = vmatpush.xpose.msk.msra.mxu1 %vm156_vm8, %v321_v59 }
 0x210   :  { %v349_v11 = vpop.permute.xlu1 %348 }
 0x281   :  { %v179_v2 = vpop.f32.mrf.mxu1 }
 0x282   :  { %v215_v4 = vsel %vm214_vm9, -1e+09, %v179_v2 }
 0x283   :  { %v218_v5 = vsel %vm217_vm10, %v215_v4, -inf }
 0x284   :  { %219 = vmax.xlane.f32.xlu2 %v218_v5 }
 0x29c   :  { %183 = vrot.lane.b32.xlu2 %v961_v61, %s820_s28 }
 0x2a4   :  { %318 = vrot.lane.b32.xlu2 %v151_v58, %s822_s29 }
 0x2f7   :  { %v220_v6 = vpop.xlane.xlu2 %219 }
 0x2f8   :  { %v224_v7 = vsub.f32 %v215_v4, %v220_v6 }
 0x2fa   :  { %v226_v8 = vmul.f32 1.442695, %v224_v7 }
 0x2fc   :  { %746 = vpow2.f32 %v226_v8 }
 0x2ff   :  { %v184_v9 = vpop.permute.xlu2 %183 }
 0x300   :  { %705 = vmatpush.xpose.msk.msra.mxu2 %vm156_vm8, %v184_v9 }
 0x302   :  { %v747_v13 = vpop.eup %746 }
 0x303   :  { %706 = vmatmul.msk.f32.vlgmr.msra.gmra.mxu2 %vm156_vm8, %v152_v12  ;;  %v230_v14 = vsel %vm217_vm10, %v747_v13, 0.0 }
 0x304   :  { %711 = vmatpush.xpose.msk.msrb.mxu2 %vm156_vm8, %v349_v11  ;;  %231 = vadd.xlane.f32.xlu0 %v230_v14 }
 0x307   :  { %v319_v31 = vpop.permute.xlu2 %318 }
 0x318   :  { %346 = vrot.lane.b32.xlu0 %v152_v12, %s822_s29 }
 0x377   :  { %v232_v15 = vpop.xlane.xlu0 %231 }
 0x378   :  { %748 = vrcp.f32 %v232_v15  ;;  %v247_v19 = vand.u32 2147483648, %v232_v15  ;;  %v245_v21 = vand.u32 2147483647, %v232_v15  ;;  %vm241_vm12 = vweird.f32 %v232_v15 }
 0x37a   :  { %v248_v23 = vor.u32 1.1754944e-38, %v247_v19  ;;  %vm246_vm14 = vcmp.eq.f32.partialorder %v245_v21, 8.507059e+37 }
 0x37e   :  { %v749_v16 = vpop.eup %748 }
 0x37f   :  { %v237_v17 = vmul.f32 %v749_v16, %v232_v15  ;;  %vm242_vm11 = vweird.f32 %v749_v16 }
 0x380   :  { %vm243_vm13 = vmor %vm241_vm12, %vm242_vm11 }
 0x381   :  { %v238_v18 = vsub.f32 1.0, %v237_v17 }
 0x383   :  { %v239_v20 = vmul.f32 %v749_v16, %v238_v18 }
 0x385   :  { %v240_v22 = vadd.f32 %v749_v16, %v239_v20 }
 0x386   :  { %v207_v24 = vpop.f32.mrf.mxu2 }
 0x387   :  { %v216_v25 = vsel %vm214_vm9, -1e+09, %v207_v24  ;;  %v244_v26 = vsel %vm243_vm13, %v749_v16, %v240_v22 }
 0x388   :  { %v221_v27 = vsel %vm217_vm10, %v216_v25, -inf  ;;  %v249_v28 = vsel %vm246_vm14, %v248_v23, %v244_v26 }
 0x389   :  { %222 = vmax.xlane.f32.xlu2 %v221_v27  ;;  %v250_v29 = vmul.f32 %v747_v13, %v249_v28 }
 0x38a   :  { %v347_v30 = vpop.permute.xlu0 %346 }
 0x38b   :  { %707 = vmatmul.msk.f32.vlgmr.msrb.gmra.mxu1 %vm217_vm10, %v250_v29  ;;  %476 = vst.msk [vmem:[#allocation4] sm:$0xff] %vm217_vm10, %v250_v29  ;;  %712 = vmatmul.msk.f32.vlgmr.msrb.gmra.mxu2 %vm156_vm8, %v347_v30 }
 0x393   :  { %710 = vmatmul.msk.f32.vlgmr.msra.gmra.mxu1 %vm156_vm8, %v319_v31 }
 0x3fc   :  { %v223_v32 = vpop.xlane.xlu2 %222 }
 0x3fd   :  { %v225_v33 = vsub.f32 %v216_v25, %v223_v32  ;;  %v493_v32 = vld [vmem:[%s1104_s5 + $0x18] sm:$0xff] }
 0x3fe   :  { %516 = vmatpush.msra.mxu2 %v493_v32  ;;  %v625_v32 = vld [vmem:[%s1110_s11 + $0x8] sm:$0xff] }
 0x3ff   :  { %v228_v34 = vmul.f32 1.442695, %v225_v33  ;;  %v492_v33 = vld [vmem:[%s1104_s5 + $0x10] sm:$0xff] }
 0x400   :  { %517 = vmatpush.msra.mxu2 %v492_v33  ;;  %v624_v33 = vld [vmem:[%s1110_s11] sm:$0xff] }
 0x401   :  { %750 = vpow2.f32 %v228_v34  ;;  %v491_v34 = vld [vmem:[%s1104_s5 + $0x8] sm:$0xff] }
 0x402   :  { %518 = vmatpush.msra.mxu2 %v491_v34  ;;  %v738_v34 = vld [vmem:[%s1109_s10] ss:$0 sm:$0xff]  ;;  %s827_s10 = smov 8  }
 0x407   :  { %v751_v35 = vpop.eup %750 }
 0x408   :  { %v988_v36 = vpop.f32.mrf.mxu1  ;;  %v233_v37 = vsel %vm217_vm10, %v751_v35, 0.0 }
 0x409   :  { %234 = vadd.xlane.f32.xlu2 %v233_v37 }
 0x40e   :  { %v371_v38 = vpop.f32.mrf.mxu2 }
 0x40f   :  { %v375_v39 = vsel %vm214_vm9, -1e+09, %v371_v38 }
 0x410   :  { %v343_v40 = vpop.f32.mrf.mxu1  ;;  %v379_v41 = vsel %vm217_vm10, %v375_v39, -inf }
 0x411   :  { %v374_v42 = vsel %vm214_vm9, -1e+09, %v343_v40  ;;  %380 = vmax.xlane.f32.xlu0 %v379_v41 }
 0x412   :  { %v376_v43 = vsel %vm217_vm10, %v374_v42, -inf }
 0x413   :  { %377 = vmax.xlane.f32.xlu1 %v376_v43 }
 0x425   :  { %292 = vrot.lane.b32.xlu0 %v961_v61, %s819_s2 }
 0x47c   :  { %v235_v44 = vpop.xlane.xlu2 %234 }
 0x47d   :  { %752 = vrcp.f32 %v235_v44  ;;  %v262_v52 = vand.u32 2147483648, %v235_v44  ;;  %v260_v56 = vand.u32 2147483647, %v235_v44  ;;  %vm256_vm1 = vweird.f32 %v235_v44 }
 0x47f   :  { %v263_v59 = vor.u32 1.1754944e-38, %v262_v52  ;;  %vm261_vm3 = vcmp.eq.f32.partialorder %v260_v56, 8.507059e+37 }
 0x483   :  { %v753_v45 = vpop.eup %752 }
 0x484   :  { %v252_v46 = vmul.f32 %v753_v45, %v235_v44  ;;  %v381_v47 = vpop.xlane.xlu0 %380  ;;  %vm257_vm15 = vweird.f32 %v753_v45  ;;  %v735_v44 = vld [vmem:[%s1105_s6] ss:$0 sm:$0xff] }
 0x485   :  { %v383_v48 = vsub.f32 %v375_v39, %v381_v47  ;;  %vm258_vm2 = vmor %vm256_vm1, %vm257_vm15  ;;  %v490_v39 = vld [vmem:[%s1104_s5] sm:$0xff]  ;;  %s826_s5 = smov 128  }
 0x486   :  { %v253_v49 = vsub.f32 1.0, %v252_v46  ;;  %v378_v50 = vpop.xlane.xlu1 %377  ;;  %519 = vmatpush.msra.mxu2 %v490_v39 }
 0x487   :  { %v386_v53 = vmul.f32 1.442695, %v383_v48  ;;  %v382_v54 = vsub.f32 %v374_v42, %v378_v50 }
 0x488   :  { %v254_v55 = vmul.f32 %v753_v45, %v253_v49 }
 0x489   :  { %754 = vpow2.f32 %v386_v53  ;;  %v384_v57 = vmul.f32 1.442695, %v382_v54 }
 0x48a   :  { %v255_v58 = vadd.f32 %v753_v45, %v254_v55 }
 0x48b   :  { %756 = vpow2.f32 %v384_v57 }
 0x48c   :  { %v259_v60 = vsel %vm258_vm2, %v753_v45, %v255_v58 }
 0x48d   :  { %v264_v62 = vsel %vm261_vm3, %v263_v59, %v259_v60 }
 0x48e   :  { %v265_v63 = vmul.f32 %v751_v35, %v264_v62  ;;  %v588_v62 = vld [vmem:[%s1108_s9 + $0x18] sm:$0xff] }
 0x48f   :  { %v755_v1 = vpop.eup %754  ;;  %611 = vmatpush.msrb.mxu0 %v588_v62 }
 0x490   :  { %v391_v2 = vsel %vm217_vm10, %v755_v1, 0.0  ;;  %478 = vst.msk [vmem:[#allocation4 + $0x10] sm:$0xff] %vm217_vm10, %v265_v63 }
 0x491   :  { %v757_v4 = vpop.eup %756  ;;  %392 = vadd.xlane.f32.xlu2 %v391_v2  ;;  %v585_v2 = vld [vmem:[%s1108_s9] sm:$0xff] }
 0x492   :  { %v388_v5 = vsel %vm217_vm10, %v757_v4, 0.0 }
 0x493   :  { %389 = vadd.xlane.f32.xlu1 %v388_v5 }
 0x497   :  { %v293_v6 = vpop.permute.xlu0 %292 }
 0x498   :  { %313 = vmatpush.msra.mxu3 %v293_v6 }
 0x499   :  { %708 = vmatmul.msk.f32.vlgmr.msra.gmra.mxu3 %vm217_vm10, %v265_v63  ;;  %v587_v63 = vld [vmem:[%s1108_s9 + $0x10] sm:$0xff] }
 0x49a   :  { %612 = vmatpush.msrb.mxu0 %v587_v63 }
 0x4a9   :  { %450 = vrot.lane.b32.xlu2 %v961_v61, %s823_s30 }
 0x4ac   :  { %424 = vrot.lane.b32.xlu1 %v950_v51, %s823_s30 }
 0x504   :  { %v393_v7 = vpop.xlane.xlu2 %392 }
 0x505   :  { %758 = vrcp.f32 %v393_v7  ;;  %v420_v16 = vand.u32 2147483648, %v393_v7  ;;  %v418_v18 = vand.u32 2147483647, %v393_v7  ;;  %vm414_vm5 = vweird.f32 %v393_v7 }
 0x506   :  { %v390_v8 = vpop.xlane.xlu1 %389 }
 0x507   :  { %760 = vrcp.f32 %v390_v8  ;;  %v405_v61 = vand.u32 2147483648, %v390_v8  ;;  %v403_v21 = vand.u32 2147483647, %v390_v8  ;;  %v421_v22 = vor.u32 1.1754944e-38, %v420_v16 }
 0x508   :  { %vm419_vm9 = vcmp.eq.f32.partialorder %v418_v18, 8.507059e+37  ;;  %vm399_vm11 = vweird.f32 %v390_v8 }
 0x509   :  { %v406_v26 = vor.u32 1.1754944e-38, %v405_v61  ;;  %vm404_vm13 = vcmp.eq.f32.partialorder %v403_v21, 8.507059e+37  ;;  %v736_v61 = vld [vmem:[%s1106_s7] ss:$0 sm:$0xff] }
 0x50a   :  { %v737_v21 = vld [vmem:[%s1107_s8] ss:$0 sm:$0xff] }
 0x50b   :  { %v759_v9 = vpop.eup %758 }
 0x50c   :  { %v410_v11 = vmul.f32 %v759_v9, %v393_v7  ;;  %v451_v12 = vpop.permute.xlu2 %450  ;;  %vm415_vm4 = vweird.f32 %v759_v9  ;;  %v627_v7 = vld [vmem:[%s1110_s11 + $0x18] sm:$0xff] }
 0x50d   :  { %v761_v13 = vpop.eup %760  ;;  %471 = vmatpush.msrb.mxu1 %v451_v12  ;;  %vm416_vm7 = vmor %vm414_vm5, %vm415_vm4 }
 0x50e   :  { %v411_v14 = vsub.f32 1.0, %v410_v11  ;;  %v395_v15 = vmul.f32 %v761_v13, %v390_v8  ;;  %vm400_vm6 = vweird.f32 %v761_v13 }
 0x50f   :  { %vm401_vm12 = vmor %vm399_vm11, %vm400_vm6 }
 0x510   :  { %v412_v17 = vmul.f32 %v759_v9, %v411_v14  ;;  %v396_v19 = vsub.f32 1.0, %v395_v15 }
 0x512   :  { %v413_v20 = vadd.f32 %v759_v9, %v412_v17  ;;  %v397_v51 = vmul.f32 %v761_v13, %v396_v19 }
 0x514   :  { %v417_v23 = vsel %vm416_vm7, %v759_v9, %v413_v20  ;;  %v398_v24 = vadd.f32 %v761_v13, %v397_v51 }
 0x515   :  { %v422_v25 = vsel %vm419_vm9, %v421_v22, %v417_v23 }
 0x516   :  { %v423_v27 = vmul.f32 %v755_v1, %v422_v25  ;;  %v402_v28 = vsel %vm401_vm12, %v761_v13, %v398_v24  ;;  %v586_v1 = vld [vmem:[%s1108_s9 + $0x8] sm:$0xff] }
 0x517   :  { %v407_v29 = vsel %vm404_vm13, %v406_v26, %v402_v28  ;;  %613 = vmatpush.msrb.mxu0 %v586_v1 }
 0x518   :  { %714 = vmatmul.msk.f32.vlgmr.msrb.gmra.mxu1 %vm217_vm10, %v423_v27  ;;  %479 = vst.msk [vmem:[#allocation4 + $0x18] sm:$0xff] %vm217_vm10, %v423_v27  ;;  %v408_v30 = vmul.f32 %v757_v4, %v407_v29 }
 0x519   :  { %614 = vmatpush.msrb.mxu0 %v585_v2 }
 0x51a   :  { %477 = vst.msk [vmem:[#allocation4 + $0x8] sm:$0xff] %vm217_vm10, %v408_v30 }
 0x51c   :  { %v315_v35 = vpop.f32.mrf.mxu3 }
 0x51e   :  { %v425_v31 = vpop.permute.xlu1 %424 }
 0x51f   :  { %445 = vmatpush.msrb.mxu3 %v425_v31  ;;  %v626_v31 = vld [vmem:[%s1110_s11 + $0x10] sm:$0xff]  ;;  %s684_s11 = sshll.u32 %s1113_s14, 4  ;;  %s685_s11 = int_to_ptr.hbm [resolvable:$true] %s684_s11 }
 0x520   :  { %713 = vmatmul.msk.f32.vlgmr.msrb.gmra.mxu3 %vm217_vm10, %v408_v30  ;;  %690 = dma.vmem_to_hbm [thread:$0]  %s683_s22, 512, %s685_s11, [#allocation5], %s826_s5, %s826_s5, %s827_s10  }
 0x521   :  { %650 = vmatpush.msra.mxu3 %v627_v7 }
 0x523   :  { %651 = vmatpush.msra.mxu3 %v626_v31 }
 0x525   :  { %652 = vmatpush.msra.mxu3 %v625_v32 }
 0x527   :  { %653 = vmatpush.msra.mxu3 %v624_v33 }
 0x595   :  { %v473_v38 = vpop.f32.mrf.mxu1 }
 0x5a3   :  { %v447_v37 = vpop.f32.mrf.mxu3 }
 0x5a4   :  { %482 = vrot.lane.b32.xlu0 %v447_v37, %s824_s20 }
 0x5ac   :  { %484 = vrot.lane.b32.xlu0 %v473_v38, %s824_s20 }
 0x616   :  { %v483_v40 = vpop.permute.xlu0 %482 }
 0x617   :  { %v488_v41 = vsel %vm156_vm8, %v988_v36, %v483_v40 }
 0x618   :  { %715 = vmatmul.msk.f32.vlgmr.msra.gmra.mxu2 %vm50_vm0, %v488_v41 }
 0x61e   :  { %v485_v42 = vpop.permute.xlu0 %484 }
 0x61f   :  { %v489_v43 = vsel %vm156_vm8, %v315_v35, %v485_v42  ;;  %v739_v42 = vld [vmem:[%s1111_s12] ss:$0 sm:$0xff] }
 0x620   :  { %716 = vmatmul.msk.f32.gmra.mxu2 %vm50_vm0, %v489_v43 }
 0x69b   :  { %v521_v45 = vpop.f32.mrf.mxu2 }
 0x69c   :  { %v522_v46 = vadd.f32 %v735_v44, %v521_v45 }
 0x69e   :  { %v1032_v47 = vadd.f32 %v522_v46, %v907_v0 }
 0x6a0   :  { %v529_v48 = vsel %vm50_vm0, %v1032_v47, 0.0 }
 0x6a1   :  { %530 = vadd.xlane.f32.xlu1 %v529_v48 }
 0x6a3   :  { %v524_v36 = vpop.f32.mrf.mxu2 }
 0x6a4   :  { %v525_v49 = vadd.f32 %v735_v44, %v524_v36 }
 0x6a6   :  { %v1037_v50 = vadd.f32 %v525_v49, %v914_v3 }
 0x6a8   :  { %v532_v52 = vsel %vm50_vm0, %v1037_v50, 0.0 }
 0x6a9   :  { %533 = vadd.xlane.f32.xlu2 %v532_v52 }
 0x714   :  { %v531_v53 = vpop.xlane.xlu1 %530 }
 0x715   :  { %v535_v54 = vmul.f32 %v531_v53, %v918_v10 }
 0x717   :  { %v537_v55 = vsub.f32 %v1032_v47, %v535_v54 }
 0x719   :  { %v539_v0 = vmul.f32 %v537_v55, %v537_v55 }
 0x71b   :  { %v541_v56 = vsel %vm50_vm0, %v539_v0, 0.0 }
 0x71c   :  { %542 = vadd.xlane.f32.xlu0 %v541_v56  ;;  %v534_v57 = vpop.xlane.xlu2 %533 }
 0x71d   :  { %v536_v58 = vmul.f32 %v534_v57, %v918_v10 }
 0x71f   :  { %v538_v59 = vsub.f32 %v1037_v50, %v536_v58 }
 0x721   :  { %v540_v3 = vmul.f32 %v538_v59, %v538_v59 }
 0x723   :  { %v544_v60 = vsel %vm50_vm0, %v540_v3, 0.0 }
 0x724   :  { %545 = vadd.xlane.f32.xlu1 %v544_v60 }
 0x78f   :  { %v543_v4 = vpop.xlane.xlu0 %542 }
 0x790   :  { %v547_v5 = vmul.f32 %v543_v4, %v918_v10 }
 0x792   :  { %v549_v6 = vadd.f32 1e-06, %v547_v5 }
 0x794   :  { %762 = vrsqrt.f32 %v549_v6  ;;  %vm557_vm10 = vweird.f32 %v549_v6 }
 0x797   :  { %v546_v8 = vpop.xlane.xlu1 %545 }
 0x798   :  { %v548_v9 = vmul.f32 %v546_v8, %v918_v10 }
 0x79a   :  { %v763_v11 = vpop.eup %762  ;;  %v550_v12 = vadd.f32 1e-06, %v548_v9 }
 0x79b   :  { %v552_v13 = vmul.f32 %v763_v11, %v549_v6  ;;  %vm558_vm8 = vweird.f32 %v763_v11 }
 0x79c   :  { %764 = vrsqrt.f32 %v550_v12  ;;  %vm559_vm14 = vmor %vm557_vm10, %vm558_vm8  ;;  %vm567_vm1 = vweird.f32 %v550_v12 }
 0x79d   :  { %v553_v14 = vmul.f32 %v763_v11, %v552_v13 }
 0x79f   :  { %v554_v15 = vmul.f32 0.5, %v553_v14 }
 0x7a1   :  { %v555_v16 = vsub.f32 1.5, %v554_v15 }
 0x7a2   :  { %v765_v17 = vpop.eup %764 }
 0x7a3   :  { %v556_v18 = vmul.f32 %v763_v11, %v555_v16  ;;  %v562_v19 = vmul.f32 %v765_v17, %v550_v12  ;;  %vm568_vm15 = vweird.f32 %v765_v17 }
 0x7a4   :  { %vm569_vm2 = vmor %vm567_vm1, %vm568_vm15 }
 0x7a5   :  { %v560_v20 = vsel %vm559_vm14, %v763_v11, %v556_v18  ;;  %v563_v51 = vmul.f32 %v765_v17, %v562_v19 }
 0x7a6   :  { %v571_v10 = vmul.f32 %v560_v20, %v537_v55 }
 0x7a7   :  { %v564_v22 = vmul.f32 0.5, %v563_v51 }
 0x7a8   :  { %v577_v23 = vmul.f32 %v736_v61, %v571_v10 }
 0x7a9   :  { %v565_v24 = vsub.f32 1.5, %v564_v22 }
 0x7aa   :  { %v583_v25 = vadd.f32 %v737_v21, %v577_v23 }
 0x7ab   :  { %v566_v26 = vmul.f32 %v765_v17, %v565_v24 }
 0x7ac   :  { %717 = vmatmul.msk.f32.vlgmr.msrb.gmra.mxu0 %vm50_vm0, %v583_v25 }
 0x7ad   :  { %v570_v27 = vsel %vm569_vm2, %v765_v17, %v566_v26 }
 0x7ae   :  { %v572_v28 = vmul.f32 %v570_v27, %v538_v59 }
 0x7b0   :  { %v578_v29 = vmul.f32 %v736_v61, %v572_v28 }
 0x7b2   :  { %v584_v30 = vadd.f32 %v737_v21, %v578_v29 }
 0x7b4   :  { %718 = vmatmul.msk.f32.gmra.mxu0 %vm50_vm0, %v584_v30 }
 0x829   :  { %v616_v35 = vpop.f32.mrf.mxu0 }
 0x82a   :  { %v617_v37 = vadd.f32 %v738_v34, %v616_v35 }
 0x82c   :  { %v622_v38 = vmax.f32 %v617_v37, 0.0 }
 0x82e   :  { %719 = vmatmul.msk.f32.vlgmr.msra.gmra.mxu3 %vm50_vm0, %v622_v38 }
 0x831   :  { %v619_v39 = vpop.f32.mrf.mxu0 }
 0x832   :  { %v620_v40 = vadd.f32 %v738_v34, %v619_v39 }
 0x834   :  { %v623_v41 = vmax.f32 %v620_v40, 0.0 }
 0x836   :  { %720 = vmatmul.msk.f32.gmra.mxu3 %vm50_vm0, %v623_v41 }
 0x8b1   :  { %v655_v43 = vpop.f32.mrf.mxu3 }
 0x8b2   :  { %v656_v44 = vadd.f32 %v739_v42, %v655_v43 }
 0x8b4   :  { %v661_v45 = vadd.f32 %v656_v44, %v1032_v47 }
 0x8b6   :  { %663 = vst.msk [vmem:[#allocation2] sm:$0xff] %vm50_vm0, %v661_v45 }
 0x8b9   :  { %v658_v46 = vpop.f32.mrf.mxu3 }
 0x8ba   :  { %v659_v48 = vadd.f32 %v739_v42, %v658_v46 }
 0x8bc   :  { %v662_v36 = vadd.f32 %v659_v48, %v1037_v50 }
 0x8be   :  { %664 = vst.msk [vmem:[#allocation2 + $0x8] sm:$0xff] %vm50_vm0, %v662_v36 }
 0x8bf   :  { %677 = dma.vmem_to_hbm [thread:$0]  %s670_s26, 256, %s672_s27, [#allocation3], %s826_s5, %s826_s5, %s827_s10  }
 0x8c0   :  { %814 = dma.done.wait [#allocation3], 256  }
 0x8c1   :  { %815 = vsyncadd [#allocation3], 4294967040 }
 0x8c2   :  { %816 = dma.done.wait [#allocation5], 512  }
 0x8c3   :  { %817 = vsyncadd [#allocation5], 4294966784 }
 0x8c4   :  { %699 = vsyncpa [#allocation3], 1 }
 0x8c5   :  { %700 = vsyncpa [#allocation5], 1 }

</bundles_post_ra>
